<compile_context>
chip_gen: v6e
topology: v6e:2x2x1
jax: 0.10.0
libtpu: 0.0.40
codegen_flags: <defaults>
</compile_context>

<pallas_src>
import functools

import numpy as np
import jax
import jax.numpy as jnp
from jax.experimental import pallas as pl
from jax.experimental.pallas import tpu as pltpu


def _fourier_kernel(x_ref, ch_ref, sh_ref, cs_ref, ss_ref, o_ref, yre_ref, yim_ref):
    # x_ref : (S, H)    current batch element (native dtype)
    # ch_ref: (H, Th)   cos-DFT columns over hidden (compute dtype)
    # sh_ref: (H, Th)   sin-DFT columns over hidden
    # cs_ref: (Ts, S)   cos-DFT rows over seq
    # ss_ref: (Ts, S)   sin-DFT rows over seq
    # o_ref : (Ts, Th)  output tile
    # yre_ref/yim_ref: (S, Th) stage-1 cache, persists across seq row tiles
    cdt = ch_ref.dtype
    si = pl.program_id(2)

    @pl.when(si == 0)
    def _():
        # Stage 1 (hidden-dim DFT) once per (batch, hidden tile); only one
        # (S, Th) f32 temporary is live at a time.
        x = x_ref[...].astype(cdt)
        yre_ref[...] = jnp.dot(x, ch_ref[...],
                               preferred_element_type=jnp.float32).astype(cdt)
        yim_ref[...] = jnp.dot(x, sh_ref[...],
                               preferred_element_type=jnp.float32).astype(cdt)

    # Stage 2 (seq-dim DFT) for this row tile; accumulate into one f32 temp.
    out = jnp.dot(cs_ref[...], yre_ref[...], preferred_element_type=jnp.float32)
    out = out - jnp.dot(ss_ref[...], yim_ref[...], preferred_element_type=jnp.float32)
    o_ref[...] = out.astype(o_ref.dtype)


@functools.lru_cache(maxsize=None)
def _dft_mats_np(n, n_pad):
    """Host-side (numpy) padded DFT cos/sin matrices; f64 trig, integer phase mod n."""
    idx = np.arange(n, dtype=np.int64)
    phase = (np.outer(idx, idx) % n).astype(np.float64) * (2.0 * np.pi / n)
    cos = np.zeros((n_pad, n_pad), dtype=np.float32)
    sin = np.zeros((n_pad, n_pad), dtype=np.float32)
    cos[:n, :n] = np.cos(phase)
    sin[:n, :n] = np.sin(phase)
    return cos, sin


def _round_up(n, m):
    return ((n + m - 1) // m) * m


def _tile_candidates(n):
    cands = [n]
    for t in (2048, 1024, 512, 256, 128):
        if t < n and n % t == 0:
            cands.append(t)
    return cands


def _working_set_bytes(S, H, tile_h, tile_s, in_bytes, c_bytes, out_bytes):
    n_h = H // tile_h
    n_s = S // tile_s
    x_b = 2 * S * H * in_bytes                                 # input block (double-buffered)
    hid_b = (2 if n_h > 1 else 1) * 2 * H * tile_h * c_bytes   # C_H + S_H
    seq_b = (2 if n_s > 1 else 1) * 2 * tile_s * S * c_bytes   # C_S + S_S
    out_b = 2 * tile_s * tile_h * out_bytes                    # output block
    scr_b = 2 * S * tile_h * c_bytes                           # Y_re + Y_im scratch
    tmp_b = 2 * tile_s * tile_h * 4                            # stage-2 f32 temporaries
    return x_b + hid_b + seq_b + out_b + scr_b + tmp_b


def _vmem_budget_bytes():
    # ~75% of per-core physical VMEM: ~96 MiB on v5e/v6e, ~48 MiB on v7x.
    try:
        cap = int(pltpu.get_tpu_info().vmem_capacity_bytes)
    except Exception:
        cap = 128 * 1024 * 1024
    return (cap * 3) // 4


def fourier_fft_layer(hidden_states, *, compute_dtype=jnp.bfloat16,
                      out_dtype=jnp.float32, tile_h=None, tile_s=None,
                      vmem_limit_bytes=None):
    """Pallas equivalent of FourierFFTLayer.forward for real inputs [B, S, H].

    compute_dtype: MXU operand dtype (accumulation is always f32). bf16 is the
      fast path; pass jnp.float32 if tight accuracy at large S*H is required.
    out_dtype: f32 matches the PyTorch module; bf16 halves writeback traffic.
    """
    B, S, H = hidden_states.shape
    in_dt = hidden_states.dtype

    # Pad ragged shapes so output stores stay lane-dense (H -> 128, S -> 8).
    Hp = max(_round_up(H, 128), 128)
    Sp = max(_round_up(S, 8), 8)
    x = hidden_states
    if (Sp, Hp) != (S, H):
        x = jnp.pad(x, ((0, 0), (0, Sp - S), (0, Hp - H)))

    in_bytes = np.dtype(in_dt).itemsize
    c_bytes = np.dtype(compute_dtype).itemsize
    out_bytes = np.dtype(out_dtype).itemsize
    budget = _vmem_budget_bytes()

    # Largest tiles whose working set fits the VMEM budget, preferring full-H
    # then full-S blocks (grid-constant DFT matrices -> DMA'd exactly once).
    h_cands = [tile_h] if tile_h is not None else _tile_candidates(Hp)
    s_cands = [tile_s] if tile_s is not None else _tile_candidates(Sp)

    th = ts = None
    for cand_h in h_cands:
        for cand_s in s_cands:
            if _working_set_bytes(Sp, Hp, cand_h, cand_s,
                                  in_bytes, c_bytes, out_bytes) <= budget:
                th, ts = cand_h, cand_s
                break
        if th is not None:
            break
    if th is None:  # nothing fits the budget estimate; take the smallest tiles
        th, ts = h_cands[-1], s_cands[-1]

    # Megacore guard: a (1, 1, 1) grid would idle one v7x TensorCore. Splitting
    # the hidden (or seq) axis duplicates no FLOPs and no HBM bytes.
    if tile_h is None and tile_s is None and B == 1 and th == Hp and ts == Sp:
        if Hp % 256 == 0:
            th = Hp // 2
        elif Sp % 16 == 0:
            ts = Sp // 2

    assert Hp % th == 0 and Sp % ts == 0, (Hp, th, Sp, ts)
    n_h = Hp // th
    n_s = Sp // ts

    c_h_np, s_h_np = _dft_mats_np(H, Hp)
    c_s_np, s_s_np = _dft_mats_np(S, Sp)
    c_h = jnp.asarray(c_h_np, dtype=compute_dtype)
    s_h = jnp.asarray(s_h_np, dtype=compute_dtype)
    c_s = jnp.asarray(c_s_np, dtype=compute_dtype)
    s_s = jnp.asarray(s_s_np, dtype=compute_dtype)

    if vmem_limit_bytes is None:
        req = _working_set_bytes(Sp, Hp, th, ts, in_bytes, c_bytes, out_bytes)
        vmem_limit_bytes = max(32 * 1024 * 1024, min(budget, (req * 3) // 2))

    # Grid-constant blocks are single-buffered (no second copy, fetched once);
    # blocks whose index varies keep default double-buffering for DMA overlap.
    hid_mode = {"pipeline_mode": pl.Buffered(1)} if n_h == 1 else {}
    seq_mode = {"pipeline_mode": pl.Buffered(1)} if n_s == 1 else {}

    out = pl.pallas_call(
        _fourier_kernel,
        out_shape=jax.ShapeDtypeStruct((B, Sp, Hp), out_dtype),
        grid_spec=pltpu.PrefetchScalarGridSpec(
            num_scalar_prefetch=0,
            grid=(B, n_h, n_s),
            in_specs=[
                pl.BlockSpec((pl.Squeezed(), Sp, Hp), lambda b, j, si: (b, 0, 0)),
                pl.BlockSpec((Hp, th), lambda b, j, si: (0, j), **hid_mode),
                pl.BlockSpec((Hp, th), lambda b, j, si: (0, j), **hid_mode),
                pl.BlockSpec((ts, Sp), lambda b, j, si: (si, 0), **seq_mode),
                pl.BlockSpec((ts, Sp), lambda b, j, si: (si, 0), **seq_mode),
            ],
            out_specs=pl.BlockSpec((pl.Squeezed(), ts, th), lambda b, j, si: (b, si, j)),
            scratch_shapes=[pltpu.VMEM((Sp, th), compute_dtype),
                            pltpu.VMEM((Sp, th), compute_dtype)],
        ),
        compiler_params=pltpu.CompilerParams(
            dimension_semantics=("parallel", "parallel", "arbitrary"),
            vmem_limit_bytes=int(vmem_limit_bytes)),
    )(x, c_h, s_h, c_s, s_s)

    if (Sp, Hp) != (S, H):
        out = out[:, :S, :H]
    return out


if __name__ == "__main__":
    key = jax.random.PRNGKey(0)

    # Small-shape check of the default bf16 MXU path (also exercises H padding 32->128).
    B, S, H = 2, 8, 32
    x = jax.random.normal(key, (B, S, H), dtype=jnp.float32)
    ref = jnp.fft.fft(jnp.fft.fft(x.astype(jnp.float32), axis=-1), axis=-2).real

    out = fourier_fft_layer(x)
    jax.block_until_ready(out)
    assert out.shape == (B, S, H) and out.dtype == jnp.float32
    # Tolerance sized for bf16 operand quantization (accumulation stays f32).
    assert jnp.allclose(out, ref, atol=1.0, rtol=5e-2), float(jnp.max(jnp.abs(out - ref)))

    # Full-precision path: tight check of the DFT-as-matmul math.
    out_f32 = fourier_fft_layer(x, compute_dtype=jnp.float32)
    jax.block_until_ready(out_f32)
    assert jnp.allclose(out_f32, ref, atol=5e-3, rtol=2e-3)

    # B == 1 path: exercises the megacore guard (hidden axis split into 2 tiles).
    x1 = jax.random.normal(jax.random.PRNGKey(1), (1, 16, 256), dtype=jnp.float32)
    ref1 = jnp.fft.fft(jnp.fft.fft(x1.astype(jnp.float32), axis=-1), axis=-2).real
    out1 = fourier_fft_layer(x1, compute_dtype=jnp.float32)
    jax.block_until_ready(out1)
    assert jnp.allclose(out1, ref1, atol=5e-3, rtol=2e-3)

    # Seq-row-tiled path (n_s = 2): exercises the stage-1 VMEM scratch cache.
    x2 = jax.random.normal(jax.random.PRNGKey(2), (2, 16, 128), dtype=jnp.float32)
    ref2 = jnp.fft.fft(jnp.fft.fft(x2.astype(jnp.float32), axis=-1), axis=-2).real
    out2 = fourier_fft_layer(x2, compute_dtype=jnp.float32, tile_s=8)
    jax.block_until_ready(out2)
    assert jnp.allclose(out2, ref2, atol=5e-3, rtol=2e-3)

    print("KERNEL_OK")
</pallas_src>

<mosaic_0001>
module attributes {stable_mosaic.version = 11 : i64} {
  func.func @_fourier_kernel(%arg0: i32, %arg1: i32, %arg2: i32, %arg3: memref<1x8x128xf32, #tpu.memory_space<vmem>>, %arg4: memref<128x128xbf16, #tpu.memory_space<vmem>>, %arg5: memref<128x128xbf16, #tpu.memory_space<vmem>>, %arg6: memref<8x8xbf16, #tpu.memory_space<vmem>>, %arg7: memref<8x8xbf16, #tpu.memory_space<vmem>>, %arg8: memref<1x8x128xf32, #tpu.memory_space<vmem>>, %arg9: memref<8x128xbf16, #tpu.memory_space<vmem>>, %arg10: memref<8x128xbf16, #tpu.memory_space<vmem>>) attributes {dimension_semantics = [#tpu.dimension_semantics<parallel>, #tpu.dimension_semantics<parallel>, #tpu.dimension_semantics<arbitrary>], iteration_bounds = array<i64: 2, 1, 1>, scalar_prefetch = 0 : i64, scratch_operands = 2 : i64, tpu.core_type = #tpu.core_type<tc>, window_params = [{transform_indices = @transform_0, window_bounds = array<i64: 1, 8, 128>}, {pipeline_mode = #tpu.pipeline_mode<synchronous>, transform_indices = @transform_1, window_bounds = array<i64: 128, 128>}, {pipeline_mode = #tpu.pipeline_mode<synchronous>, transform_indices = @transform_2, window_bounds = array<i64: 128, 128>}, {pipeline_mode = #tpu.pipeline_mode<synchronous>, transform_indices = @transform_3, window_bounds = array<i64: 8, 8>}, {pipeline_mode = #tpu.pipeline_mode<synchronous>, transform_indices = @transform_4, window_bounds = array<i64: 8, 8>}, {transform_indices = @transform_5, window_bounds = array<i64: 1, 8, 128>}]} {
    %c0_i32 = arith.constant 0 : i32
    %0 = arith.cmpi eq, %arg2, %c0_i32 : i32
    %1 = arith.extui %0 : i1 to i32
    %c0_i32_0 = arith.constant 0 : i32
    %2 = arith.cmpi ne, %1, %c0_i32_0 : i32
    scf.if %2 {
      %c0_12 = arith.constant 0 : index
      %c0_13 = arith.constant 0 : index
      %c0_14 = arith.constant 0 : index
      %13 = vector.load %arg3[%c0_12, %c0_13, %c0_14] : memref<1x8x128xf32, #tpu.memory_space<vmem>>, vector<1x8x128xf32>
      %14 = vector.shape_cast %13 : vector<1x8x128xf32> to vector<8x128xf32>
      %15 = arith.truncf %14 : vector<8x128xf32> to vector<8x128xbf16>
      %c0_15 = arith.constant 0 : index
      %c0_16 = arith.constant 0 : index
      %16 = vector.load %arg4[%c0_15, %c0_16] : memref<128x128xbf16, #tpu.memory_space<vmem>>, vector<128x128xbf16>
      %cst_17 = arith.constant dense<0.000000e+00> : vector<8x128xf32>
      %17 = tpu.matmul %15, %16, %cst_17 {dimension_numbers = #tpu.dot_dimension_numbers<[1], [0], [0], [1], [0, 0, 1, 1], [], []>} : vector<8x128xbf16>, vector<128x128xbf16>, vector<8x128xf32> -> vector<8x128xf32>
      %18 = arith.truncf %17 : vector<8x128xf32> to vector<8x128xbf16>
      %c0_18 = arith.constant 0 : index
      %c0_19 = arith.constant 0 : index
      %19 = vector.load %arg9[%c0_18, %c0_19] : memref<8x128xbf16, #tpu.memory_space<vmem>>, vector<8x128xbf16>
      tpu.vector_store %arg9[%c0_18, %c0_19], %18 {strides = array<i32>} : memref<8x128xbf16, #tpu.memory_space<vmem>>, vector<8x128xbf16>,
      %c0_20 = arith.constant 0 : index
      %c0_21 = arith.constant 0 : index
      %20 = vector.load %arg5[%c0_20, %c0_21] : memref<128x128xbf16, #tpu.memory_space<vmem>>, vector<128x128xbf16>
      %cst_22 = arith.constant dense<0.000000e+00> : vector<8x128xf32>
      %21 = tpu.matmul %15, %20, %cst_22 {dimension_numbers = #tpu.dot_dimension_numbers<[1], [0], [0], [1], [0, 0, 1, 1], [], []>} : vector<8x128xbf16>, vector<128x128xbf16>, vector<8x128xf32> -> vector<8x128xf32>
      %22 = arith.truncf %21 : vector<8x128xf32> to vector<8x128xbf16>
      %c0_23 = arith.constant 0 : index
      %c0_24 = arith.constant 0 : index
      %23 = vector.load %arg10[%c0_23, %c0_24] : memref<8x128xbf16, #tpu.memory_space<vmem>>, vector<8x128xbf16>
      tpu.vector_store %arg10[%c0_23, %c0_24], %22 {strides = array<i32>} : memref<8x128xbf16, #tpu.memory_space<vmem>>, vector<8x128xbf16>,
    } else {
    }
    %c0 = arith.constant 0 : index
    %c0_1 = arith.constant 0 : index
    %3 = vector.load %arg6[%c0, %c0_1] : memref<8x8xbf16, #tpu.memory_space<vmem>>, vector<8x8xbf16>
    %c0_2 = arith.constant 0 : index
    %c0_3 = arith.constant 0 : index
    %4 = vector.load %arg9[%c0_2, %c0_3] : memref<8x128xbf16, #tpu.memory_space<vmem>>, vector<8x128xbf16>
    %cst = arith.constant dense<0.000000e+00> : vector<8x128xf32>
    %5 = tpu.matmul %3, %4, %cst {dimension_numbers = #tpu.dot_dimension_numbers<[1], [0], [0], [1], [0, 0, 1, 1], [], []>} : vector<8x8xbf16>, vector<8x128xbf16>, vector<8x128xf32> -> vector<8x128xf32>
    %c0_4 = arith.constant 0 : index
    %c0_5 = arith.constant 0 : index
    %6 = vector.load %arg7[%c0_4, %c0_5] : memref<8x8xbf16, #tpu.memory_space<vmem>>, vector<8x8xbf16>
    %c0_6 = arith.constant 0 : index
    %c0_7 = arith.constant 0 : index
    %7 = vector.load %arg10[%c0_6, %c0_7] : memref<8x128xbf16, #tpu.memory_space<vmem>>, vector<8x128xbf16>
    %cst_8 = arith.constant dense<0.000000e+00> : vector<8x128xf32>
    %8 = tpu.matmul %6, %7, %cst_8 {dimension_numbers = #tpu.dot_dimension_numbers<[1], [0], [0], [1], [0, 0, 1, 1], [], []>} : vector<8x8xbf16>, vector<8x128xbf16>, vector<8x128xf32> -> vector<8x128xf32>
    %9 = arith.subf %5, %8 : vector<8x128xf32>
    %c0_9 = arith.constant 0 : index
    %c0_10 = arith.constant 0 : index
    %c0_11 = arith.constant 0 : index
    %10 = vector.load %arg8[%c0_9, %c0_10, %c0_11] : memref<1x8x128xf32, #tpu.memory_space<vmem>>, vector<1x8x128xf32>
    %11 = vector.shape_cast %10 : vector<1x8x128xf32> to vector<8x128xf32>
    %12 = vector.shape_cast %9 : vector<8x128xf32> to vector<1x8x128xf32>
    tpu.vector_store %arg8[%c0_9, %c0_10, %c0_11], %12 {strides = array<i32>} : memref<1x8x128xf32, #tpu.memory_space<vmem>>, vector<1x8x128xf32>,
    return
  }
  func.func @transform_0(%arg0: i32, %arg1: i32, %arg2: i32) -> (i32, i32, i32) {
    %c0_i32 = arith.constant 0 : i32
    %c0_i32_0 = arith.constant 0 : i32
    %c0_i32_1 = arith.constant 0 : i32
    return %arg0, %c0_i32, %c0_i32_0 : i32, i32, i32
  }
  func.func @transform_1(%arg0: i32, %arg1: i32, %arg2: i32) -> (i32, i32) {
    %c0_i32 = arith.constant 0 : i32
    %c0_i32_0 = arith.constant 0 : i32
    return %c0_i32, %arg1 : i32, i32
  }
  func.func @transform_2(%arg0: i32, %arg1: i32, %arg2: i32) -> (i32, i32) {
    %c0_i32 = arith.constant 0 : i32
    %c0_i32_0 = arith.constant 0 : i32
    return %c0_i32, %arg1 : i32, i32
  }
  func.func @transform_3(%arg0: i32, %arg1: i32, %arg2: i32) -> (i32, i32) {
    %c0_i32 = arith.constant 0 : i32
    %c0_i32_0 = arith.constant 0 : i32
    return %arg2, %c0_i32 : i32, i32
  }
  func.func @transform_4(%arg0: i32, %arg1: i32, %arg2: i32) -> (i32, i32) {
    %c0_i32 = arith.constant 0 : i32
    %c0_i32_0 = arith.constant 0 : i32
    return %arg2, %c0_i32 : i32, i32
  }
  func.func @transform_5(%arg0: i32, %arg1: i32, %arg2: i32) -> (i32, i32, i32) {
    %c0_i32 = arith.constant 0 : i32
    return %arg0, %arg2, %arg1 : i32, i32, i32
  }
}

</mosaic_0001>

<bundles_post_ra>
// kernel: tpu_custom_call.1
= control target key start
LH: loop header
LB: loop body
LE: loop exit
PB: predicated region body
PF: predicated region fallthrough
CT: control target
= control target key end

     0   :  { %s1483_s0 = inlined_call_operand.hbm [shape: f32[2,8,128], index: 0, kind: input, shape index: {}]   ;;  %s1484_s1 = inlined_call_operand.hbm [shape: bf16[128,128], index: 1, kind: input, shape index: {}]   ;;  %s1485_s2 = inlined_call_operand.hbm [shape: bf16[128,128], index: 2, kind: input, shape index: {}]   ;;  %s1486_s3 = inlined_call_operand.vmem [shape: bf16[8,8], index: 3, kind: input, shape index: {}]   ;;  %s1487_s4 = inlined_call_operand.hbm [shape: bf16[8,8], index: 4, kind: input, shape index: {}]   ;;  %s1488_s5 = inlined_call_operand.hbm [shape: f32[2,8,128], index: 5, kind: output, shape index: {}]  }
   0x1   :  { %1493 = sst [smem:[#allocation17_spill]] %s1484_s1 }
   0x2   :  { %10 = vsyncpa [#allocation5], 0 }
   0x3   :  { %12 = vsyncpa [#allocation5 + $0x1], 0 }
   0x4   :  { %13 = vsyncpa [#allocation8], 0 }
   0x5   :  { %14 = vsyncpa [#allocation11], 0 }
   0x6   :  { %15 = vsyncpa [#allocation6], 0 }
   0x7   :  { %17 = vsyncpa [#allocation6 + $0x1], 0  ;;  %s1271_s18 = smov 0   ;;  %s1273_s19 = smov 0  }
   0x8   :  { %s1275_s20 = smov 0   ;;  %s1277_s21 = smov 0  }
   0x9   :  { %s1279_s22 = smov 0   ;;  %s1281_s23 = smov 0  }
   0xa LB: > { %s811_s24 = sadd.s32 4294967295, %s1230_s23   ;;  %s812_s25 = sadd.s32 4294967294, %s1230_s23   ;;  %s1230_s23 = sphi %s1281_s23, %s23_s23   ;;  %s1226_s22 = sphi %s1279_s22, %s1512_s22   ;;  %s1222_s21 = sphi %s1277_s21, %s1511_s21   ;;  %s1218_s20 = sphi %s1275_s20, %s1510_s20   ;;  %s1214_s19 = sphi %s1273_s19, %s1509_s19   ;;  %s1210_s18 = sphi %s1271_s18, %s1508_s18  }
   0xb   : > { %p62_p0 = scmp.ne.s32.totalorder %s1214_s19, %s1210_s18  ;;  %p1305_p1 = scmp.eq.s32.totalorder %s811_s24, 0 }
   0xc   : > { %p1309_p2 = scmp.eq.s32.totalorder %s811_s24, 1  ;;  %p200_p3 = scmp.eq.s32.totalorder %s812_s25, 1 }
   0xd   : > { %s1494_s26 = scalar_select %p1305_p1, 1, 0 }
   0xe   : > { %p1315_p4 = por %p1305_p1, %p62_p0  ;;  %p813_p5 = scmp.ge.s32.totalorder %s1230_s23, 1 }
   0xf   : > { %p1320_p6 = por %p200_p3, %p62_p0  ;;  %p207_p7 = scmp.lt.s32.totalorder %s1230_s23, 3 }
  0x10   : > { %s1496_s28 = scalar_select %p1315_p4, 1, 0 }
  0x11   : > { %s1497_s29 = scalar_select %p1320_p6, 1, 0 }
  0x12   : > { %p1325_p8 = pnand %p813_p5, %p207_p7  ;;  %s1232_s6 = smov [#allocation7]  }
  0x13   : > { %s221_s7 = sshll.u32 %s1232_s6, 4  ;;  %s1233_s9 = smov [#allocation9]   ;;  %s222_s7 = int_to_ptr.vmem [resolvable:$true] %s221_s7 }
  0x14   : > { %s1498_s30 = scalar_select %p1325_p8, 1, 0 }
  0x15   : > { %p939_p9 = pneg %p1325_p8  ;;  %s236_s10 = sshll.u32 %s1233_s9, 4  ;;  %s237_s10 = int_to_ptr.vmem [resolvable:$true] %s236_s10 }
  0x16   : > { %s1234_s11 = smov [#allocation10]   ;;  %s1047_s13 = scalar_lea.vmem %s222_s7, 1024 }
  0x17   : > { %p1334_p11 = pnand %p939_p9, %p1305_p1  ;;  %s259_s12 = sshll.u32 %s1234_s11, 4  ;;  %s260_s12 = int_to_ptr.vmem [resolvable:$true] %s259_s12 }
  0x18   : > { %p1048_p13 = scmp.ne.s32.totalorder %s222_s7, %s1047_s13  ;;  %p1055_p5 = scmp.lt.s32.totalorder %s222_s7, %s222_s7 }
  0x19   : > { %p1038_p12 = pneg %p1334_p11  ;;  %p1056_p7 = scmp.lt.s32.totalorder %s1047_s13, %s1047_s13 }
  0x1b   : > { %p1050_p0 = pnand %p1048_p13, %p1038_p12  ;;  %p1057_p9 = por %p1056_p7, %p1055_p5 }
  0x1d   : > { %p1051_p3 = pneg %p1050_p0 }
  0x1f   : > { %p1058_p10 = pnand %p1057_p9, %p1051_p3 }
  0x21   : > { %1061 = shalt.err (!%p1058_p10)
}
  0x22   : > { %s1235_s14 = smov 64   ;;  %s1236_s15 = smov 4  }
  0x23   : > { %s1500_s1 = sld [smem:[#allocation17_spill]]  ;;  %s1073_s24 = scalar_lea.vmem %s237_s10, 1024 }
  0x24   : > { %p1074_p6 = scmp.ne.s32.totalorder %s237_s10, %s1073_s24  ;;  %p1081_p1 = scmp.lt.s32.totalorder %s237_s10, %s237_s10 }
  0x25   : > { %p1082_p4 = scmp.lt.s32.totalorder %s1073_s24, %s1073_s24 }
  0x26   : > { %p1076_p13 = pnand %p1074_p6, %p1038_p12 }
  0x27   : > { %p1083_p5 = por %p1082_p4, %p1081_p1 }
  0x28   : > { %p1077_p0 = pneg %p1076_p13 }
  0x29   : > { %942 = dma.hbm_to_vmem [thread:$0]  (!%p1334_p11), %s1500_s1, 1024, %s222_s7, [#allocation8], %s1235_s14, %s1235_s14, %s1236_s15  }
  0x2a   : > { %p1084_p3 = pnand %p1083_p5, %p1077_p0 }
  0x2c   : > { %1087 = shalt.err (!%p1084_p3)
}
  0x2d   : > { %945 = dma.hbm_to_vmem [thread:$0]  (!%p1334_p11), %s1485_s2, 1024, %s237_s10, [#allocation8], %s1235_s14, %s1235_s14, %s1236_s15  }
  0x2e   : > { %s1099_s7 = scalar_lea.vmem %s260_s12, 64  ;;  %p1107_p9 = scmp.lt.s32.totalorder %s260_s12, %s260_s12 }
  0x2f   : > { %p1100_p10 = scmp.ne.s32.totalorder %s260_s12, %s1099_s7  ;;  %p1108_p13 = scmp.lt.s32.totalorder %s1099_s7, %s1099_s7 }
  0x31   : > { %p1102_p7 = pnand %p1100_p10, %p1038_p12  ;;  %p1109_p8 = por %p1108_p13, %p1107_p9 }
  0x33   : > { %p1103_p6 = pneg %p1102_p7 }
  0x35   : > { %p1110_p1 = pnand %p1109_p8, %p1103_p6 }
  0x37   : > { %1113 = shalt.err (!%p1110_p1)
}
  0x38   : > { %948 = dma.hbm_to_vmem [thread:$0]  (!%p1334_p11), %s1487_s4, 64, %s260_s12, [#allocation11]  }
  0x39   : > { %s49_s10 = sadd.s32 1, %s1218_s20  ;;  %s42_s13 = sadd.s32 1, %s1226_s22 }
  0x3a   : > { %p56_p4 = scmp.ne.s32.totalorder %s1218_s20, %s1214_s19  ;;  %p44_p8 = scmp.ge.s32.totalorder %s42_s13, 2 }
  0x3b   : > { %p57_p12 = scmp.eq.s32.totalorder %s1230_s23, 0  ;;  %p960_p5 = scmp.lt.s32.totalorder %s1230_s23, 2 }
  0x3c   : > { %p1371_p0 = por %p1309_p2, %p56_p4  ;;  %s1514_s13 = smov (%p44_p8, %s42_s13), 0 }
  0x3d   : > { %p58_p3 = por %p57_p12, %p56_p4  ;;  %s270_s14 = sand.u32 1, %s1218_s20  }
  0x3e   : > { %s46_s15 = ssub.s32 %s1226_s22, %s1514_s13  ;;  %s819_s12 = sshll.u32 %s270_s14, 3 }
  0x3f   : > { %p47_p10 = scmp.eq.s32.totalorder %s46_s15, 0  ;;  %s820_s16 = sshll.u32 %s1226_s22, 7 }
  0x40   : > { %s279_s27 = scalar_lea.hbm %s1483_s0, %s820_s16  ;;  %s274_s6 = scalar_lea.vmem [#allocation4], %s819_s12 }
  0x41   : > { %s1383_s17 = scalar_select %p47_p10, %s1218_s20, %s49_s10  }
  0x42   : > { %s281_s7 = sshll.u32 %s274_s6, 4  ;;  %p1390_p2 = pnand %p960_p5, %p58_p3  ;;  %s282_s7 = int_to_ptr.vmem [resolvable:$true] %s281_s7 }
  0x43   : > { %s271_s11 = scalar_lea.sflag [#allocation5], %s270_s14  ;;  %s1127_s15 = scalar_lea.vmem %s282_s7, 128 }
  0x44   : > { %p1116_p11 = pneg %p1390_p2  ;;  %p1128_p7 = scmp.ne.s32.totalorder %s282_s7, %s1127_s15 }
  0x45   : > { %s1237_s10 = smov [#allocation4]  }
  0x46   : > { %p1130_p6 = pnand %p1128_p7, %p1116_p11  ;;  %s1132_s1 = sshll.u32 %s1237_s10, 4  ;;  %s1133_s1 = int_to_ptr.vmem [resolvable:$false] %s1132_s1 }
  0x47   : > { %s1134_s16 = scalar_lea.vmem %s1133_s1, 256  ;;  %p1135_p13 = scmp.lt.s32.totalorder %s282_s7, %s1133_s1 }
  0x48   : > { %p1131_p9 = pneg %p1130_p6  ;;  %p1136_p1 = scmp.lt.s32.totalorder %s1134_s16, %s1127_s15 }
  0x4a   : > { %p1137_p4 = por %p1136_p1, %p1135_p13 }
  0x4c   : > { %p1138_p8 = pnand %p1137_p4, %p1131_p9 }
  0x4e   : > { %1141 = shalt.err (!%p1138_p8)
}
  0x4f   : > { %952 = dma.hbm_to_vmem [thread:$0]  (!%p1390_p2), %s279_s27, 128, %s282_s7, %s271_s11  }
  0x50   : > { %p1503_p12 = scmp.ne.s32.totalorder %s1498_s30, 0 }
  0x51   : > { %s1401_s14 = sand.u32 (!%p1503_p12), 1, %s1214_s19   ;;  %p1504_p5 = scmp.ne.s32.totalorder (!%p1503_p12), %s1496_s28, 0 }
  0x52   : > { %290 = sbr.rel (%p1503_p12) target bundleno = 543 (0x21f), region = 40  ;;  %s822_s12 = sshll.u32 (!%p1503_p12), %s1401_s14, 3 }
  0x53   : > { %s293_s24 = scalar_lea.sflag (!%p1503_p12), [#allocation5], %s1401_s14  ;;  %s1407_s1 = scalar_lea.vmem (!%p1503_p12), [#allocation4], %s822_s12 }
  0x57   : > { %1193 = dma.done.wait (%p1504_p5), %s293_s24, 128  }
  0x58   : > { %1195 = vsyncadd (%p1504_p5), %s293_s24, 4294967168  ;;  %p1505_p3 = scmp.ne.s32.totalorder %s1494_s26, 0 }
  0x5a   : > { %1197 = dma.done.wait (%p1505_p3), [#allocation8], 2048  }
  0x5b   : > { %1199 = vsyncadd (%p1505_p3), [#allocation8], 4294965248 }
  0x5c   : > { %1201 = dma.done.wait (%p1505_p3), [#allocation11], 64  }
  0x5d   : > { %1203 = vsyncadd (%p1505_p3), [#allocation11], 4294967232  ;;  %v1238_v0 = vmov 0.0   ;;  %vm1239_vm0 = vmmov 0   ;;  %v1020_v1 = vld [vmem:[#allocation7 + $0x38] sm:$0xff]   ;;  %v1022_v3 = vld [vmem:[#allocation7 + $0x30] sm:$0xff]  }
  0x5e   : > { %871 = vmatprep.subr.bf16.mxu0 %v1238_v0  ;;  %891 = vmatprep.subr.bf16.mxu1 %v1238_v0  ;;  %v1021_v2 = vld [vmem:[#allocation9 + $0x38] sm:$0xff]   ;;  %v1023_v4 = vld [vmem:[#allocation9 + $0x30] sm:$0xff]   ;;  %v1024_v5 = vld [vmem:[#allocation7 + $0x28] sm:$0xff]   ;;  %vm568_vm1 = vcmask 1043456   ;;  %vm564_vm2 = vcmask 64512   ;;  %s846_s30 = sshll.u32 %s1222_s21, 7 }
  0x5f   : > { %887 = vmatprep.mubr.msk.bf16.mxu0 %vm1239_vm0, %v1238_v0  ;;  %907 = vmatprep.mubr.msk.bf16.mxu1 %vm1239_vm0, %v1238_v0  ;;  %v1025_v6 = vld [vmem:[#allocation9 + $0x28] sm:$0xff]   ;;  %v1026_v7 = vld [vmem:[#allocation7 + $0x20] sm:$0xff]   ;;  %v1028_v9 = vld [vmem:[#allocation7 + $0x18] sm:$0xff]   ;;  %s338_s25 = scalar_lea.vmem [#allocation12], %s822_s12  ;;  %s1435_s9 = scalar_lea.hbm %s1488_s5, %s846_s30 }
  0x60   : > { %872 = vmatpush3.bf16.msra.mxu0 %v1020_v1  ;;  %892 = vmatpush3.bf16.msra.mxu1 %v1021_v2  ;;  %v1027_v8 = vld [vmem:[#allocation9 + $0x20] sm:$0xff]   ;;  %v1029_v10 = vld [vmem:[#allocation9 + $0x18] sm:$0xff]   ;;  %v1030_v11 = vld [vmem:[#allocation7 + $0x10] sm:$0xff]   ;;  %s678_s27 = sshll.u32 %s338_s25, 4  ;;  %s663_s21 = scalar_lea.sflag [#allocation6], %s1401_s14  ;;  %s1437_s27 = int_to_ptr.vmem [resolvable:$true] %s678_s27 }
  0x61   : > { %873 = vmatprep.subr.bf16.mxu0 %v1238_v0  ;;  %893 = vmatprep.subr.bf16.mxu1 %v1238_v0  ;;  %v1031_v12 = vld [vmem:[#allocation9 + $0x10] sm:$0xff]   ;;  %v1032_v13 = vld [vmem:[#allocation7 + $0x8] sm:$0xff]   ;;  %v1034_v15 = vld [vmem:[#allocation7] sm:$0xff]   ;;  %s1142_s11 = scalar_lea.vmem %s1437_s27, 128  ;;  %s1240_s15 = smov [#allocation12]  }
  0x62   : > { %v1033_v14 = vld [vmem:[#allocation9 + $0x8] sm:$0xff]   ;;  %v348_v16 = vld [vmem:[%s1407_s1] sm:$0xff]  ;;  %v1035_v17 = vld [vmem:[#allocation9] sm:$0xff]   ;;  %p1143_p10 = scmp.ne.s32.totalorder %s1437_s27, %s1142_s11  ;;  %s1146_s10 = sshll.u32 %s1240_s15, 4  ;;  %s1147_s10 = int_to_ptr.vmem [resolvable:$false] %s1146_s10 }
  0x63   : > { %v349_v18 = vpack.c.bf16 %v348_v16, %v348_v16  ;;  %v562_v33 = vld [vmem:[%s1486_s3] sm:$0xf]  ;;  %v612_v34 = vld [vmem:[#allocation10] sm:$0xf]  ;;  %s1148_s16 = scalar_lea.vmem %s1147_s10, 256  ;;  %p1149_p7 = scmp.lt.s32.totalorder %s1437_s27, %s1147_s10 }
  0x64   : > { %874 = vmatpush3.bf16.msra.mxu0 %v1022_v3  ;;  %894 = vmatpush3.bf16.msra.mxu1 %v1023_v4  ;;  %p1144_p2 = pnand %p1143_p10, %p1371_p0  ;;  %p1150_p6 = scmp.lt.s32.totalorder %s1148_s16, %s1142_s11 }
  0x65   : > { %875 = vmatprep.subr.bf16.mxu0 %v1238_v0  ;;  %895 = vmatprep.subr.bf16.mxu1 %v1238_v0 }
  0x66   : > { %p1145_p11 = pneg %p1144_p2  ;;  %p1151_p9 = por %p1150_p6, %p1149_p7 }
  0x68   : > { %876 = vmatpush3.bf16.msra.mxu0 %v1024_v5  ;;  %896 = vmatpush3.bf16.msra.mxu1 %v1025_v6  ;;  %p1152_p13 = pnand %p1151_p9, %p1145_p11 }
  0x69   : > { %877 = vmatprep.subr.bf16.mxu0 %v1238_v0  ;;  %897 = vmatprep.subr.bf16.mxu1 %v1238_v0 }
  0x6c   : > { %878 = vmatpush3.bf16.msra.mxu0 %v1026_v7  ;;  %898 = vmatpush3.bf16.msra.mxu1 %v1027_v8 }
  0x6d   : > { %879 = vmatprep.subr.bf16.mxu0 %v1238_v0  ;;  %899 = vmatprep.subr.bf16.mxu1 %v1238_v0 }
  0x70   : > { %880 = vmatpush3.bf16.msra.mxu0 %v1028_v9  ;;  %900 = vmatpush3.bf16.msra.mxu1 %v1029_v10 }
  0x71   : > { %881 = vmatprep.subr.bf16.mxu0 %v1238_v0  ;;  %901 = vmatprep.subr.bf16.mxu1 %v1238_v0 }
  0x74   : > { %882 = vmatpush3.bf16.msra.mxu0 %v1030_v11  ;;  %902 = vmatpush3.bf16.msra.mxu1 %v1031_v12 }
  0x75   : > { %883 = vmatprep.subr.bf16.mxu0 %v1238_v0  ;;  %903 = vmatprep.subr.bf16.mxu1 %v1238_v0 }
  0x78   : > { %884 = vmatpush3.bf16.msra.mxu0 %v1032_v13  ;;  %904 = vmatpush3.bf16.msra.mxu1 %v1033_v14 }
  0x79   : > { %885 = vmatprep.subr.bf16.mxu0 %v1238_v0  ;;  %905 = vmatprep.subr.bf16.mxu1 %v1238_v0 }
  0x7c   : > { %886 = vmatpush3.bf16.msra.mxu0 %v1034_v15  ;;  %906 = vmatpush3.bf16.msra.mxu1 %v1035_v17 }
  0x7d   : > { %911 = vmatprep.subr.bf16.mxu0 %v1238_v0  ;;  %917 = vmatprep.subr.bf16.mxu1 %v1238_v0 }
  0x7f   : > { %888 = vmatmul.mubr.bf16.vlgmr.msra.gmra.mxu0 %v349_v18  ;;  %908 = vmatmul.mubr.bf16.vlgmr.msra.gmra.mxu1 %v349_v18 }
  0x80   : > { %913 = vmatprep.mubr.msk.bf16.mxu0 %vm1239_vm0, %v1238_v0  ;;  %919 = vmatprep.mubr.msk.bf16.mxu1 %vm1239_vm0, %v1238_v0 }
 0x13f   : > { %v448_v19 = vpop.f32.mrf.mxu0  ;;  %v554_v21 = vpop.f32.mrf.mxu1 }
 0x140   : > { %v454_v20 = vpack.c.bf16 %v448_v19, %v448_v19  ;;  %v560_v22 = vpack.c.bf16 %v554_v21, %v554_v21 }
 0x141   : > { %v889_v23 = vpop.f32.mrf.mxu0  ;;  %v909_v24 = vpop.f32.mrf.mxu1 }
 0x142   : > { %455 = vst [vmem:[#allocation2] sm:$0xf] %v454_v20  ;;  %561 = vst [vmem:[#allocation3] sm:$0xf] %v560_v22 }
 0x143   : > { %v451_v25 = vpop.f32.mrf.mxu0  ;;  %v557_v26 = vpop.f32.mrf.mxu1 }
 0x145   : > { %v890_v27 = vpop.f32.mrf.mxu0  ;;  %v910_v28 = vpop.f32.mrf.mxu1 }
 0x149   : > { %v563_v29 = vld [vmem:[#allocation2] sm:$0xf]  ;;  %v613_v31 = vld [vmem:[#allocation3] sm:$0xf] }
 0x14a   : > { %v570_v30 = vsel %vm568_vm1, %v563_v29, 0  ;;  %v618_v32 = vsel %vm568_vm1, %v613_v31, 0 }
 0x14b   : > { %912 = vmatpush3.bf16.msra.mxu0 %v570_v30  ;;  %918 = vmatpush3.bf16.msra.mxu1 %v618_v32 }
 0x14e   : > { %914 = vmatmul.mubr.msk.bf16.vlgmr.msra.gmra.mxu0 %vm564_vm2, %v562_v33  ;;  %920 = vmatmul.mubr.msk.bf16.vlgmr.msra.gmra.mxu1 %vm564_vm2, %v612_v34 }
 0x20e   : > { %v606_v35 = vpop.f32.mrf.mxu0  ;;  %v654_v36 = vpop.f32.mrf.mxu1 }
 0x20f   : > { %v660_v37 = vsub.f32 %v606_v35, %v654_v36 }
 0x210   : > { %v915_v38 = vpop.f32.mrf.mxu0  ;;  %v921_v39 = vpop.f32.mrf.mxu1 }
 0x211   : > { %661 = vst [vmem:[%s338_s25] sm:$0xff] %v660_v37 }
 0x212   : > { %v609_v40 = vpop.f32.mrf.mxu0  ;;  %v657_v41 = vpop.f32.mrf.mxu1 }
 0x213   : > { %1155 = shalt.err (!%p1152_p13)
}
 0x214   : > { %s1156_s12 = scalar_lea.hbm %s1435_s9, 128  ;;  %s1160_s1 = scalar_lea.hbm %s1488_s5, 256 }
 0x215   : > { %p1157_p1 = scmp.ne.s32.totalorder %s1435_s9, %s1156_s12  ;;  %p1161_p12 = scmp.lt.s32.totalorder %s1435_s9, %s1488_s5 }
 0x216   : > { %p1162_p5 = scmp.lt.s32.totalorder %s1160_s1, %s1156_s12 }
 0x217   : > { %p1158_p4 = pnand %p1157_p1, %p1371_p0 }
 0x218   : > { %p1163_p3 = por %p1162_p5, %p1161_p12 }
 0x219   : > { %p1159_p8 = pneg %p1158_p4 }
 0x21b   : > { %p1164_p10 = pnand %p1163_p3, %p1159_p8 }
 0x21d   : > { %1167 = shalt.err (!%p1164_p10)
}
 0x21e   : > { %937 = dma.vmem_to_hbm [thread:$0]  (%p1371_p0), %s1437_s27, 128, %s1435_s9, %s663_s21   ;;  %v916_v42 = vpop.f32.mrf.mxu0  ;;  %v922_v43 = vpop.f32.mrf.mxu1 }
 0x21f PF: > { %s690_s30 = sand.u32 1, %s1210_s18   ;;  %p1506_p2 = scmp.ne.s32.totalorder %s1497_s29, 0 }
 0x220   : > { %p1507_p11 = scmp.ge.s32.totalorder %s1230_s23, 2  ;;  %s691_s25 = scalar_lea.sflag [#allocation6], %s690_s30 }
 0x222   : > { %p954_p7 = pnand %p1507_p11, %p1506_p2 }
 0x224   : > { %p955_p6 = pneg %p954_p7 }
 0x226   : > { %1205 = dma.done.wait (%p955_p6), %s691_s25, 128  }
 0x227   : > { %1207 = vsyncadd (%p955_p6), %s691_s25, 4294967168  ;;  %s23_s23 = sadd.s32 1, %s1230_s23   ;;  %s1508_s18 = smov %s1214_s19 }
 0x228   : > { %p20_p9 = scmp.ge.s32.totalorder %s23_s23, 4   ;;  %s1509_s19 = smov %s1218_s20 }
 0x229   : > { %s1510_s20 = smov %s1383_s17  ;;  %s1511_s21 = smov %s1226_s22 }
 0x22a   : > { %s1512_s22 = smov %s1514_s13  ;;  %22 = sbr.rel (!%p20_p9) target bundleno = 10 (0xa), region = 107 }
 0x22f   :  { %696 = vsyncpa [#allocation5], 1 }
 0x230   :  { %698 = vsyncpa [#allocation5 + $0x1], 1 }
 0x231   :  { %699 = vsyncpa [#allocation8], 1 }
 0x232   :  { %700 = vsyncpa [#allocation11], 1 }
 0x233   :  { %701 = vsyncpa [#allocation6], 1 }
 0x234   :  { %703 = vsyncpa [#allocation6 + $0x1], 1 }

</bundles_post_ra>
